<compile_context>
chip_gen: v7x
topology: tpu7x:2x2x1
jax: 0.10.0
libtpu: 0.0.40
codegen_flags: <defaults>
</compile_context>

<pallas_src>
import jax
import jax.numpy as jnp
from jax.experimental import pallas as pl
from jax.experimental.pallas import tpu as pltpu

_WIDTH_CANDIDATES = (2048, 1024, 512, 256, 128)  # lane-dense last dims (mult of 128)


def _lr_kernel(w_ref, b_ref, x_ref, o_ref):
    # w_ref / b_ref: (1,) f32 scalars in SMEM (scalar prefetch).
    # x_ref / o_ref: (tile_rows, width) VMEM tiles.
    o_ref[...] = (x_ref[...] * w_ref[0] + b_ref[0]).astype(o_ref.dtype)


def _tpu_generation() -> int:
    """Best-effort TPU generation (5 / 6 / 7); 0 if unknown."""
    try:
        kind = jax.devices()[0].device_kind.lower()
    except Exception:
        return 0
    for gen in (7, 6, 5):
        if str(gen) in kind:
            return gen
    return 0


def _round_up(x: int, m: int) -> int:
    return ((x + m - 1) // m) * m


def lr_forward(x: jax.Array, w: jax.Array, b: jax.Array, *,
               donate_x: bool = False) -> jax.Array:
    """y = w * x + b with scalar w, b broadcast over x (any shape)."""
    orig_shape = x.shape
    n = int(x.size)
    itemsize = jnp.dtype(x.dtype).itemsize

    # SMEM scalars are 32-bit words: force f32 params (robust if caller passes bf16).
    w32 = jnp.asarray(w, dtype=jnp.float32).reshape(-1)[:1]
    b32 = jnp.asarray(b, dtype=jnp.float32).reshape(-1)[:1]

    # ---- lane-dense width: largest candidate dividing n -> zero-copy fast path
    width = None
    for cand in _WIDTH_CANDIDATES:
        if n >= cand and n % cand == 0:
            width = cand
            break
    needs_pad = width is None
    if needs_pad:
        width = 128

    flat = x.reshape(-1)
    padded_n = _round_up(n, width) if needs_pad else n
    if padded_n != n:
        flat = jnp.pad(flat, (0, padded_n - n))  # slow fallback path only
    rows = padded_n // width
    x2 = flat.reshape(rows, width)

    # ---- generation-aware tile size / buffering / VMEM limit -----------------
    gen = _tpu_generation()
    if gen >= 7:
        tile_bytes = 4 * 1024 * 1024   # 64 MiB VMEM on v7x: keep headroom
        vmem_limit = 48 * 1024 * 1024
        n_buffers = 3                  # deeper pipeline hides per-step overhead
    elif gen in (5, 6):
        tile_bytes = 8 * 1024 * 1024   # 128 MiB VMEM: bigger tiles amortize steps
        vmem_limit = 64 * 1024 * 1024  # v5e default scoped VMEM is only 16 MiB
        n_buffers = 2
    else:
        tile_bytes = 4 * 1024 * 1024
        vmem_limit = 48 * 1024 * 1024
        n_buffers = 2

    # Dtype-aware sublane alignment: 8 rows for f32, 16 for bf16, 32 for int8.
    row_align = 8 * max(1, 4 // itemsize)
    bytes_per_row = width * itemsize
    budget_rows = max(row_align,
                      (tile_bytes // bytes_per_row) // row_align * row_align)

    if rows <= row_align:
        tile_rows = rows  # single full-dim block (legal: equals full array dim)
    else:
        # Aim for >=2 tiles so v7x megacore gets work on both TensorCores.
        half_rows = _round_up(-(-rows // 2), row_align)
        tile_rows = min(budget_rows, half_rows, rows)
        tile_rows = max(row_align, (tile_rows // row_align) * row_align)

    num_tiles = pl.cdiv(rows, tile_rows)

    x_spec_kwargs = {}
    o_spec_kwargs = {}
    if n_buffers != 2:  # only deviate from default double-buffering on v7x
        x_spec_kwargs["pipeline_mode"] = pl.Buffered(n_buffers)
        o_spec_kwargs["pipeline_mode"] = pl.Buffered(n_buffers)

    out2 = pl.pallas_call(
        _lr_kernel,
        out_shape=jax.ShapeDtypeStruct((rows, width), x.dtype),
        grid_spec=pltpu.PrefetchScalarGridSpec(
            num_scalar_prefetch=2,                       # w, b -> SMEM
            grid=(num_tiles,),
            in_specs=[
                pl.BlockSpec((tile_rows, width),
                             lambda i, w_ref, b_ref: (i, 0),
                             **x_spec_kwargs),
            ],
            out_specs=pl.BlockSpec((tile_rows, width),
                                   lambda i, w_ref, b_ref: (i, 0),
                                   **o_spec_kwargs),
        ),
        compiler_params=pltpu.CompilerParams(
            dimension_semantics=("parallel",),           # megacore sharding on v7x
            vmem_limit_bytes=vmem_limit,
        ),
        cost_estimate=pl.CostEstimate(
            flops=2 * padded_n,
            bytes_accessed=2 * padded_n * itemsize + 8,
            transcendentals=0,
        ),
        # x2 is operand index 2 (after the two scalar-prefetch operands).
        input_output_aliases=({2: 0} if donate_x else {}),
    )(w32, b32, x2)

    if padded_n != n:
        return out2.reshape(-1)[:n].reshape(orig_shape)
    return out2.reshape(orig_shape)


if __name__ == "__main__":
    key = jax.random.PRNGKey(0)
    kx, kw, kb = jax.random.split(key, 3)

    # Parameters: the module draws 1-element float tensors in __init__.
    w = jax.random.normal(kw, (1,), dtype=jnp.float32)
    b = jax.random.normal(kb, (1,), dtype=jnp.float32)

    # Small input; LRModel broadcasts the scalar params over any shape.
    x = jax.random.normal(kx, (2, 4, 16, 16), dtype=jnp.float32)

    y = jax.block_until_ready(lr_forward(x, w, b))

    # Correctness check against plain JAX reference.
    y_ref = w[0] * x + b[0]
    assert y.shape == x.shape and y.dtype == x.dtype
    assert jnp.allclose(y, y_ref, atol=1e-6, rtol=1e-6)

    print("KERNEL_OK")
</pallas_src>

<mosaic_0001>
module attributes {stable_mosaic.version = 11 : i64} {
  func.func @_lr_kernel(%arg0: i32, %arg1: memref<1xf32, #tpu.memory_space<smem>>, %arg2: memref<1xf32, #tpu.memory_space<smem>>, %arg3: memref<1x2048xf32, #tpu.memory_space<vmem>>, %arg4: memref<1x2048xf32, #tpu.memory_space<vmem>>) attributes {dimension_semantics = [#tpu.dimension_semantics<parallel>], iteration_bounds = array<i64: 1>, scalar_prefetch = 2 : i64, scratch_operands = 0 : i64, tpu.core_type = #tpu.core_type<tc>, window_params = [{transform_indices = @transform_0, window_bounds = array<i64: 1, 2048>}, {transform_indices = @transform_1, window_bounds = array<i64: 1, 2048>}]} {
    %c0 = arith.constant 0 : index
    %c0_0 = arith.constant 0 : index
    %0 = vector.load %arg3[%c0, %c0_0] : memref<1x2048xf32, #tpu.memory_space<vmem>>, vector<1x2048xf32>
    %c0_1 = arith.constant 0 : index
    %1 = memref.load %arg1[%c0_1] : memref<1xf32, #tpu.memory_space<smem>>
    %2 = vector.broadcast %1 : f32 to vector<1x2048xf32>
    %3 = arith.mulf %0, %2 : vector<1x2048xf32>
    %c0_2 = arith.constant 0 : index
    %4 = memref.load %arg2[%c0_2] : memref<1xf32, #tpu.memory_space<smem>>
    %5 = vector.broadcast %4 : f32 to vector<1x2048xf32>
    %6 = arith.addf %3, %5 : vector<1x2048xf32>
    %c0_3 = arith.constant 0 : index
    %c0_4 = arith.constant 0 : index
    %7 = vector.load %arg4[%c0_3, %c0_4] : memref<1x2048xf32, #tpu.memory_space<vmem>>, vector<1x2048xf32>
    tpu.vector_store %arg4[%c0_3, %c0_4], %6 {strides = array<i32>} : memref<1x2048xf32, #tpu.memory_space<vmem>>, vector<1x2048xf32>,
    return
  }
  func.func @transform_0(%arg0: i32, %arg1: memref<1xf32, #tpu.memory_space<smem>>, %arg2: memref<1xf32, #tpu.memory_space<smem>>) -> (i32, i32) {
    %c0_i32 = arith.constant 0 : i32
    %c0_i32_0 = arith.constant 0 : i32
    return %arg0, %c0_i32 : i32, i32
  }
  func.func @transform_1(%arg0: i32, %arg1: memref<1xf32, #tpu.memory_space<smem>>, %arg2: memref<1xf32, #tpu.memory_space<smem>>) -> (i32, i32) {
    %c0_i32 = arith.constant 0 : i32
    %c0_i32_0 = arith.constant 0 : i32
    return %arg0, %c0_i32 : i32, i32
  }
}

</mosaic_0001>

<bundles_post_ra>
// kernel: tpu_custom_call.1
= control target key start
LH: loop header
LB: loop body
LE: loop exit
PB: predicated region body
PF: predicated region fallthrough
CT: control target
= control target key end

     0   :  { %10 = vsyncpa [#allocation6], 0  ;;  %s154_s0 = inlined_call_operand.<no memory space> [shape: f32[1], index: 0, kind: input, shape index: {}]   ;;  %s155_s1 = inlined_call_operand.<no memory space> [shape: f32[1], index: 1, kind: input, shape index: {}]   ;;  %s156_s2 = inlined_call_operand.hbm [shape: f32[1,2048], index: 2, kind: input, shape index: {}]   ;;  %s157_s3 = inlined_call_operand.hbm [shape: f32[1,2048], index: 3, kind: output, shape index: {}]  }
   0x1   :  { %11 = vsyncpa [#allocation7], 0  ;;  %s102_s12 = smov [#allocation5]   ;;  %s54_s16 = scalar_lea.hbm %s156_s2, 256 }
   0x2   :  { %s18_s13 = sshll.u32 %s102_s12, 4  ;;  %p55_p0 = scmp.ne.s32.totalorder %s156_s2, %s54_s16  ;;  %s19_s13 = int_to_ptr.vmem [resolvable:$true] %s18_s13 }
   0x3   :  { %p58_p1 = scmp.lt.u32.totalorder %s54_s16, %s156_s2 }
   0x5   :  { %p60_p2 = pnand %p58_p1, %p55_p0 }
   0x7   :  { %63 = shalt.err (!%p60_p2)
}
   0x8   :  { %s64_s21 = scalar_lea.vmem %s19_s13, 256  ;;  %p69_p4 = scmp.lt.s32.totalorder %s19_s13, %s19_s13 }
   0x9   :  { %p65_p3 = scmp.ne.s32.totalorder %s19_s13, %s64_s21  ;;  %p70_p5 = scmp.lt.s32.totalorder %s64_s21, %s64_s21 }
   0xb   :  { %p71_p6 = por %p70_p5, %p69_p4 }
   0xd   :  { %p72_p7 = pnand %p71_p6, %p65_p3 }
   0xf   :  { %75 = shalt.err (!%p72_p7)
}
  0x10   :  { %21 = dma.hbm_to_vmem [thread:$0]  %s156_s2, 256, %s19_s13, [#allocation6]  }
  0x11   :  { %98 = dma.done.wait [#allocation6], 256  }
  0x12   :  { %99 = vsyncadd [#allocation6], 4294967040  ;;  %v28_v0 = vstv %s154_s0  ;;  %v25_v1 = vld [vmem:[#allocation5] sm:$0xff]  ;;  %v32_v2 = vstv %s155_s1  ;;  %v26_v3 = vld [vmem:[#allocation5 + $0x8] sm:$0xff]  ;;  %s103_s28 = smov [#allocation8]  }
  0x13   :  { %s43_s29 = sshll.u32 %s103_s28, 4  ;;  %v29_v4 = vmul.f32 %v28_v0, %v25_v1  ;;  %v30_v5 = vmul.f32 %v28_v0, %v26_v3  ;;  %s44_s29 = int_to_ptr.vmem [resolvable:$true] %s43_s29 }
  0x14   :  { %s76_s2 = scalar_lea.vmem %s44_s29, 256  ;;  %p81_p9 = scmp.lt.s32.totalorder %s44_s29, %s44_s29 }
  0x15   :  { %v33_v6 = vadd.f32 %v32_v2, %v29_v4  ;;  %v34_v7 = vadd.f32 %v32_v2, %v30_v5  ;;  %p77_p8 = scmp.ne.s32.totalorder %s44_s29, %s76_s2  ;;  %p82_p10 = scmp.lt.s32.totalorder %s76_s2, %s76_s2 }
  0x17   :  { %35 = vst [vmem:[#allocation8] sm:$0xff] %v33_v6  ;;  %36 = vst [vmem:[#allocation8 + $0x8] sm:$0xff] %v34_v7  ;;  %p83_p11 = por %p82_p10, %p81_p9 }
  0x19   :  { %p84_p12 = pnand %p83_p11, %p77_p8 }
  0x1b   :  { %87 = shalt.err (!%p84_p12)
}
  0x1c   :  { %s88_s1 = scalar_lea.hbm %s157_s3, 256 }
  0x1d   :  { %p89_p13 = scmp.ne.s32.totalorder %s157_s3, %s88_s1  ;;  %p92_p0 = scmp.lt.u32.totalorder %s88_s1, %s157_s3 }
  0x1f   :  { %p94_p1 = pnand %p92_p0, %p89_p13 }
  0x21   :  { %97 = shalt.err (!%p94_p1)
}
  0x22   :  { %46 = dma.vmem_to_hbm [thread:$0]  %s44_s29, 256, %s157_s3, [#allocation7]  }
  0x23   :  { %100 = dma.done.wait [#allocation7], 256  }
  0x24   :  { %101 = vsyncadd [#allocation7], 4294967040 }
  0x25   :  { %50 = vsyncpa [#allocation6], 1 }
  0x26   :  { %51 = vsyncpa [#allocation7], 1 }

</bundles_post_ra>
